<compile_context>
chip_gen: v5e
topology: v5e:2x2
jax: 0.10.0
libtpu: 0.0.40
codegen_flags: <defaults>
</compile_context>

<pallas_src>
import functools

import jax
import jax.numpy as jnp
from jax.experimental import pallas as pl
from jax.experimental.pallas import tpu as pltpu


def _round_up(x, m):
    return (x + m - 1) // m * m


# ---------------------------------------------------------------------------
# Pallas kernel: one (batch, N-tile, M-tile) block of cos(freq * ||z - mu||)
# ---------------------------------------------------------------------------
def _fourier_tile_kernel(zt_ref, mu_ref, freq_ref, o_ref, *, min_freq, max_freq):
    zt = zt_ref[0]                                        # [P, tm]  (P on sublanes)
    mu = mu_ref[0]                                        # [tn, P]
    f = jnp.clip(freq_ref[0], min_freq, max_freq)         # [tn, 1]

    mu2 = jnp.sum(mu * mu, axis=1, keepdims=True)         # [tn, 1]
    z2 = jnp.sum(zt * zt, axis=0, keepdims=True)          # [1, tm]
    cross = jnp.dot(mu, zt, preferred_element_type=jnp.float32)   # MXU, [tn, tm]

    d2 = jnp.maximum(mu2 + z2 - 2.0 * cross, 0.0)         # clamp cancellation noise
    o_ref[0] = jnp.cos(f * jnp.sqrt(d2))                  # lane-dense [tn, tm] store


# ---------------------------------------------------------------------------
# Wrapper: layout glue (transpose / zero-pad) + pallas_call
# ---------------------------------------------------------------------------
def fourier_kernel_forward(z, mu, freq, *, min_freq=0.1, max_freq=10.0,
                           tile_n=256, tile_m=512):
    z = jnp.asarray(z, jnp.float32)
    mu = jnp.asarray(mu, jnp.float32)
    freq = jnp.asarray(freq, jnp.float32)
    if z.ndim == 2:                       # [M, P] -> [1, M, P] (broadcast over B)
        z = z[None]
    if freq.ndim == 2:                    # accept [B, N] as well as [B, N, 1]
        freq = freq[..., None]

    Bz, M, P = z.shape
    B, N, _ = mu.shape

    # Tile sizes: lane axis (M) multiple of 128, sublane axis (N) multiple of 8.
    tn = tile_n if N > tile_n else _round_up(N, 8)
    tm = tile_m if M > tile_m else _round_up(M, 128)
    Np = _round_up(N, tn)
    Mp = _round_up(M, tm)
    Pp = _round_up(P, 8)

    # Glue: z^T as [Bz, P, M]; zero-pad P / N / M (padding is exact for the
    # distance math and the padded outputs are sliced off below).
    z_t = jnp.transpose(z, (0, 2, 1))
    z_t = jnp.pad(z_t, ((0, 0), (0, Pp - P), (0, Mp - M)))
    mu_p = jnp.pad(mu, ((0, 0), (0, Np - N), (0, Pp - P)))
    fr_p = jnp.pad(freq, ((0, 0), (0, Np - N), (0, 0)))

    grid = (B, Np // tn, Mp // tm)
    z_idx = (lambda b, n, m: (0, 0, m)) if Bz == 1 else (lambda b, n, m: (b, 0, m))

    kernel = functools.partial(_fourier_tile_kernel,
                               min_freq=float(min_freq), max_freq=float(max_freq))

    out = pl.pallas_call(
        kernel,
        out_shape=jax.ShapeDtypeStruct((B, Np, Mp), jnp.float32),
        grid=grid,
        in_specs=[
            pl.BlockSpec((1, Pp, tm), z_idx),                      # z^T tile
            pl.BlockSpec((1, tn, Pp), lambda b, n, m: (b, n, 0)),  # mu tile
            pl.BlockSpec((1, tn, 1), lambda b, n, m: (b, n, 0)),   # freq tile
        ],
        out_specs=pl.BlockSpec((1, tn, tm), lambda b, n, m: (b, n, m)),
        compiler_params=pltpu.CompilerParams(
            dimension_semantics=("parallel", "parallel", "parallel")),
    )(z_t, mu_p, fr_p)
    return out[:, :N, :M]


# ---------------------------------------------------------------------------
# Pure-JAX reference (mirrors the PyTorch forward) for correctness checking
# ---------------------------------------------------------------------------
def reference_forward(z, mu, freq, min_freq=0.1, max_freq=10.0):
    z = jnp.asarray(z, jnp.float32)
    mu = jnp.asarray(mu, jnp.float32)
    freq = jnp.asarray(freq, jnp.float32)
    if z.ndim == 2:
        z = z[None]
    if freq.ndim == 2:
        freq = freq[..., None]
    f = jnp.clip(freq, min_freq, max_freq)                                # [B, N, 1]
    d = jnp.linalg.norm(z[:, None, :, :] - mu[:, :, None, :], axis=-1)    # [B, N, M]
    return jnp.cos(f * d)


if __name__ == "__main__":
    key = jax.random.PRNGKey(0)

    # Case 1: shared 2-D grid z [M, P] (the usual compute_influence_matrix path)
    B, N, M, P = 2, 8, 128, 3
    kz, km, kf, key = jax.random.split(key, 4)
    z = jax.random.uniform(kz, (M, P), jnp.float32)                       # grid pts
    mu = jax.random.uniform(km, (B, N, P), jnp.float32)                   # token pos
    freq = jax.random.uniform(kf, (B, N, 1), jnp.float32, 0.05, 12.0)     # hits clamp

    out = jax.block_until_ready(fourier_kernel_forward(z, mu, freq))
    assert out.shape == (B, N, M), out.shape
    ref = jax.block_until_ready(reference_forward(z, mu, freq))
    err1 = float(jnp.max(jnp.abs(out - ref)))
    assert err1 < 2e-3, f"case1 max abs err {err1}"

    # Case 2: batched z [B, M, P] with non-aligned N / M (exercises padding)
    B2, N2, M2 = 2, 5, 200
    kz2, km2, kf2, key = jax.random.split(key, 4)
    z2 = jax.random.uniform(kz2, (B2, M2, P), jnp.float32)
    mu2 = jax.random.uniform(km2, (B2, N2, P), jnp.float32)
    fr2 = jax.random.uniform(kf2, (B2, N2, 1), jnp.float32, 0.05, 12.0)

    out2 = jax.block_until_ready(fourier_kernel_forward(z2, mu2, fr2))
    assert out2.shape == (B2, N2, M2), out2.shape
    ref2 = jax.block_until_ready(reference_forward(z2, mu2, fr2))
    err2 = float(jnp.max(jnp.abs(out2 - ref2)))
    assert err2 < 2e-3, f"case2 max abs err {err2}"

    print("KERNEL_OK")
</pallas_src>

<mosaic_0001>
module attributes {stable_mosaic.version = 11 : i64} {
  func.func @_fourier_tile_kernel(%arg0: i32, %arg1: i32, %arg2: i32, %arg3: memref<1x8x128xf32, #tpu.memory_space<vmem>>, %arg4: memref<1x8x8xf32, #tpu.memory_space<vmem>>, %arg5: memref<1x8x1xf32, #tpu.memory_space<vmem>>, %arg6: memref<1x8x128xf32, #tpu.memory_space<vmem>>) attributes {dimension_semantics = [#tpu.dimension_semantics<parallel>, #tpu.dimension_semantics<parallel>, #tpu.dimension_semantics<parallel>], iteration_bounds = array<i64: 2, 1, 1>, scalar_prefetch = 0 : i64, scratch_operands = 0 : i64, tpu.core_type = #tpu.core_type<tc>, window_params = [{transform_indices = @transform_0, window_bounds = array<i64: 1, 8, 128>}, {transform_indices = @transform_1, window_bounds = array<i64: 1, 8, 8>}, {transform_indices = @transform_2, window_bounds = array<i64: 1, 8, 1>}, {transform_indices = @transform_3, window_bounds = array<i64: 1, 8, 128>}]} {
    %c0 = arith.constant 0 : index
    %c0_0 = arith.constant 0 : index
    %c0_1 = arith.constant 0 : index
    %0 = vector.load %arg3[%c0, %c0_0, %c0_1] : memref<1x8x128xf32, #tpu.memory_space<vmem>>, vector<1x8x128xf32>
    %1 = vector.shape_cast %0 : vector<1x8x128xf32> to vector<8x128xf32>
    %c0_2 = arith.constant 0 : index
    %c0_3 = arith.constant 0 : index
    %c0_4 = arith.constant 0 : index
    %2 = vector.load %arg4[%c0_2, %c0_3, %c0_4] : memref<1x8x8xf32, #tpu.memory_space<vmem>>, vector<1x8x8xf32>
    %3 = vector.shape_cast %2 : vector<1x8x8xf32> to vector<8x8xf32>
    %c0_5 = arith.constant 0 : index
    %c0_6 = arith.constant 0 : index
    %c0_7 = arith.constant 0 : index
    %4 = vector.load %arg5[%c0_5, %c0_6, %c0_7] : memref<1x8x1xf32, #tpu.memory_space<vmem>>, vector<1x8x1xf32>
    %5 = vector.shape_cast %4 : vector<1x8x1xf32> to vector<8x1xf32>
    %cst = arith.constant 1.000000e-01 : f32
    %cst_8 = arith.constant 1.000000e+01 : f32
    %6 = vector.broadcast %cst : f32 to vector<8x1xf32>
    %7 = arith.maximumf %6, %5 : vector<8x1xf32>
    %8 = vector.broadcast %cst_8 : f32 to vector<8x1xf32>
    %9 = arith.minimumf %8, %7 : vector<8x1xf32>
    %10 = arith.mulf %3, %3 : vector<8x8xf32>
    %cst_9 = arith.constant dense<0.000000e+00> : vector<8xf32>
    %11 = vector.multi_reduction <add>, %10, %cst_9 [1] : vector<8x8xf32> to vector<8xf32>
    %12 = vector.shape_cast %11 : vector<8xf32> to vector<8x1xf32>
    %13 = arith.mulf %1, %1 : vector<8x128xf32>
    %cst_10 = arith.constant dense<0.000000e+00> : vector<128xf32>
    %14 = vector.multi_reduction <add>, %13, %cst_10 [0] : vector<8x128xf32> to vector<128xf32>
    %15 = vector.shape_cast %14 : vector<128xf32> to vector<1x128xf32>
    %cst_11 = arith.constant dense<0.000000e+00> : vector<8x128xf32>
    %16 = tpu.matmul %3, %1, %cst_11 {dimension_numbers = #tpu.dot_dimension_numbers<[1], [0], [0], [1], [0, 0, 1, 1], [], []>} : vector<8x8xf32>, vector<8x128xf32>, vector<8x128xf32> -> vector<8x128xf32>
    %17 = vector.broadcast %12 : vector<8x1xf32> to vector<8x128xf32>
    %18 = vector.broadcast %15 : vector<1x128xf32> to vector<8x128xf32>
    %19 = arith.addf %17, %18 : vector<8x128xf32>
    %cst_12 = arith.constant 2.000000e+00 : f32
    %20 = vector.broadcast %cst_12 : f32 to vector<8x128xf32>
    %21 = arith.mulf %20, %16 : vector<8x128xf32>
    %22 = arith.subf %19, %21 : vector<8x128xf32>
    %cst_13 = arith.constant 0.000000e+00 : f32
    %23 = vector.broadcast %cst_13 : f32 to vector<8x128xf32>
    %24 = arith.maximumf %22, %23 : vector<8x128xf32>
    %25 = math.sqrt %24 : vector<8x128xf32>
    %26 = vector.broadcast %9 : vector<8x1xf32> to vector<8x128xf32>
    %27 = arith.mulf %26, %25 : vector<8x128xf32>
    %28 = math.cos %27 : vector<8x128xf32>
    %c0_14 = arith.constant 0 : index
    %c0_15 = arith.constant 0 : index
    %c0_16 = arith.constant 0 : index
    %29 = vector.load %arg6[%c0_14, %c0_15, %c0_16] : memref<1x8x128xf32, #tpu.memory_space<vmem>>, vector<1x8x128xf32>
    %30 = vector.shape_cast %29 : vector<1x8x128xf32> to vector<8x128xf32>
    %31 = vector.shape_cast %28 : vector<8x128xf32> to vector<1x8x128xf32>
    tpu.vector_store %arg6[%c0_14, %c0_15, %c0_16], %31 {strides = array<i32>} : memref<1x8x128xf32, #tpu.memory_space<vmem>>, vector<1x8x128xf32>,
    return
  }
  func.func @transform_0(%arg0: i32, %arg1: i32, %arg2: i32) -> (i32, i32, i32) {
    %c0_i32 = arith.constant 0 : i32
    %c0_i32_0 = arith.constant 0 : i32
    %c0_i32_1 = arith.constant 0 : i32
    return %c0_i32, %c0_i32_0, %arg2 : i32, i32, i32
  }
  func.func @transform_1(%arg0: i32, %arg1: i32, %arg2: i32) -> (i32, i32, i32) {
    %c0_i32 = arith.constant 0 : i32
    %c0_i32_0 = arith.constant 0 : i32
    return %arg0, %arg1, %c0_i32 : i32, i32, i32
  }
  func.func @transform_2(%arg0: i32, %arg1: i32, %arg2: i32) -> (i32, i32, i32) {
    %c0_i32 = arith.constant 0 : i32
    %c0_i32_0 = arith.constant 0 : i32
    return %arg0, %arg1, %c0_i32 : i32, i32, i32
  }
  func.func @transform_3(%arg0: i32, %arg1: i32, %arg2: i32) -> (i32, i32, i32) {
    %c0_i32 = arith.constant 0 : i32
    return %arg0, %arg1, %arg2 : i32, i32, i32
  }
}

</mosaic_0001>

<bundles_post_ra>
// kernel: tpu_custom_call.1
= control target key start
LH: loop header
LB: loop body
LE: loop exit
PB: predicated region body
PF: predicated region fallthrough
CT: control target
= control target key end

     0   :  { %8 = vsyncpa [#allocation3], 0  ;;  %s997_s0 = inlined_call_operand.hbm [shape: f32[1,8,128], index: 0, kind: input, shape index: {}]   ;;  %s998_s1 = inlined_call_operand.vmem [shape: f32[2,8,8], index: 1, kind: input, shape index: {}]   ;;  %s999_s2 = inlined_call_operand.vmem [shape: f32[2,8,1], index: 2, kind: input, shape index: {}]   ;;  %s1000_s3 = inlined_call_operand.hbm [shape: f32[2,8,128], index: 3, kind: output, shape index: {}]  }
   0x1   :  { %9 = vsyncpa [#allocation4], 0 }
   0x2   :  { %11 = vsyncpa [#allocation4 + $0x1], 0  ;;  %s825_s12 = smov 0   ;;  %s827_s13 = smov 0  }
   0x3   :  { %s829_s14 = smov 0   ;;  %s831_s15 = smov 0  }
   0x4   :  { %s833_s16 = smov 0   ;;  %s835_s17 = smov 0  }
   0x5 LB: > { %s589_s18 = sadd.s32 4294967295, %s795_s17   ;;  %s590_s19 = sadd.s32 4294967294, %s795_s17   ;;  %s795_s17 = sphi %s835_s17, %s17_s17   ;;  %s791_s16 = sphi %s833_s16, %s1009_s16   ;;  %s787_s15 = sphi %s831_s15, %s1008_s15   ;;  %s783_s14 = sphi %s829_s14, %s1007_s14   ;;  %s779_s13 = sphi %s827_s13, %s1006_s13   ;;  %s775_s12 = sphi %s825_s12, %s1005_s12  }
   0x6   : > { %s36_s20 = sadd.s32 1, %s791_s16  ;;  %s129_s21 = sadd.s32 1, %s783_s14 }
   0x7   : > { %p38_p0 = scmp.ge.s32.totalorder %s36_s20, 2  ;;  %p139_p1 = scmp.ne.s32.totalorder %s783_s14, %s779_s13 }
   0x8   : > { %p140_p2 = scmp.eq.s32.totalorder %s589_s18, 1  ;;  %p145_p3 = scmp.ne.s32.totalorder %s779_s13, %s775_s12 }
   0x9   : > { %s1011_s20 = smov (%p38_p0, %s36_s20), 0  ;;  %p146_p5 = scmp.eq.s32.totalorder %s590_s19, 1 }
   0xa   : > { %p865_p4 = por %p140_p2, %p139_p1  ;;  %s122_s23 = ssub.s32 %s791_s16, %s1011_s20 }
   0xb   : > { %p591_p6 = scmp.ge.s32.totalorder %s795_s17, 1  ;;  %p127_p7 = scmp.eq.s32.totalorder %s122_s23, 0 }
   0xc   : > { %p872_p8 = por %p146_p5, %p145_p3  ;;  %p153_p9 = scmp.lt.s32.totalorder %s795_s17, 3 }
   0xd   : > { %s878_s25 = scalar_select %p127_p7, %s783_s14, %s129_s21  }
   0xe   : > { %p154_p10 = pnand %p591_p6, %p153_p9  ;;  %p621_p11 = scmp.eq.s32.totalorder %s589_s18, 0 }
   0xf   : > { %s167_s28 = sshll.u32 %s997_s0, 4  ;;  %s797_s29 = smov [#allocation2]   ;;  %s168_s28 = int_to_ptr.hbm [resolvable:$true] %s167_s28 }
  0x10   : > { %p613_p12 = pneg %p154_p10  ;;  %s169_s30 = sshll.u32 %s797_s29, 4  ;;  %s170_s30 = int_to_ptr.vmem [resolvable:$true] %s169_s30 }
  0x11   : > { %202 = sbr.rel (%p154_p10) target bundleno = 284 (0x11c), region = 32 }
  0x12   : > { %p614_p13 = pnand %p621_p11, %p613_p12 }
  0x14   : > { %616 = dma.hbm_to_vmem [thread:$0]  (!%p614_p13), %s168_s28, 128, %s170_s30, [#allocation3]  }
  0x16   : > { %766 = dma.done.wait (%p621_p11), [#allocation3], 128  }
  0x17   : > { %768 = vsyncadd (%p621_p11), [#allocation3], 4294967168  ;;  %p236_p0 = scmp.lt.s32.totalorder %s787_s15, 1  ;;  %v798_v0 = vmov 0   ;;  %vm256_vm0 = vcmask 64512   ;;  %v250_v1 = vld [vmem:[#allocation2] sm:$0xff] }
  0x18   : > { %680 = vset.pattern.permute.xlu0 %v798_v0  ;;  %285 = vmatpush.msra.mxu0 %v250_v1  ;;  %v260_v8 = vmul.f32 %v250_v1, %v250_v1  ;;  %v799_v44 = vmov 683565275   ;;  %v800_v46 = vmov 2475754826   ;;  %v801_v49 = vmov 2131351028  }
  0x19   : > { %s237_s4 = scalar_select %p236_p0, %s787_s15, 1  ;;  %v802_v52 = vmov 2102212464   ;;  %v803_v55 = vmov 920167782  }
  0x1a   : > { %v261_v9 = vrot.slane %v260_v8, 4  ;;  %v804_v58 = vmov 1326507024   ;;  %s233_s18 = sand.u32 1, %s779_s13   ;;  %s604_s21 = sshll.u32 %s787_s15, 3 }
  0x1b   : > { %s597_s5 = sshll.u32 %s237_s4, 3  ;;  %s596_s19 = sshll.u32 %s233_s18, 3 }
  0x1c   : > { %s242_s8 = scalar_lea.vmem %s998_s1, %s597_s5  ;;  %s249_s11 = scalar_lea.vmem %s999_s2, %s597_s5  ;;  %v262_v10 = vadd.f32 %v261_v9, %v260_v8 }
  0x1d   : > { %v251_v2 = vld [vmem:[%s242_s8] sm:$0xff]  ;;  %s480_s27 = scalar_lea.hbm %s1000_s3, %s604_s21  ;;  %s235_s28 = scalar_lea.vmem [#allocation5], %s596_s19 }
  0x1e   : > { %v255_v3 = vmul.f32 %v251_v2, %v251_v2  ;;  %599 = vmatmul.msk.f32.vlgmr.msra.gmra.mxu0 %vm256_vm0, %v251_v2  ;;  %v252_v5 = vld [vmem:[%s249_s11] sm:$0xff]  ;;  %v263_v11 = vrot.slane %v262_v10, 2  ;;  %s482_s29 = sshll.u32 %s235_s28, 4  ;;  %s484_s30 = sshll.u32 %s480_s27, 4  ;;  %s483_s29 = int_to_ptr.vmem [resolvable:$true] %s482_s29  ;;  %s485_s30 = int_to_ptr.hbm [resolvable:$true] %s484_s30 }
  0x1f   : > { %v253_v6 = vmax.f32 %v252_v5, 0.1  ;;  %s468_s15 = scalar_lea.sflag [#allocation4], %s233_s18  ;;  %s727_s4 = sshra.s32 %s485_s30, 4  ;;  %s728_s4 = int_to_ptr.hbm [resolvable:$true] %s727_s4 }
  0x20   : > { %v257_v4 = vsel %vm256_vm0, %v255_v3, 0.0  ;;  %v264_v12 = vadd.f32 %v263_v11, %v262_v10  ;;  %s729_s5 = scalar_lea.hbm %s728_s4, 8  ;;  %s733_s8 = scalar_lea.hbm %s1000_s3, 16 }
  0x21   : > { %258 = vadd.xlane.f32.xlu0 %v257_v4  ;;  %v254_v7 = vmin.f32 %v253_v6, 10.0  ;;  %p730_p1 = scmp.ne.s32.totalorder %s728_s4, %s729_s5  ;;  %p734_p5 = scmp.lt.s32.totalorder %s728_s4, %s1000_s3 }
  0x22   : > { %v265_v13 = vrot.slane %v264_v12, 1  ;;  %p735_p6 = scmp.lt.s32.totalorder %s733_s8, %s729_s5 }
  0x23   : > { %p731_p2 = pnand %p730_p1, %p865_p4 }
  0x24   : > { %v266_v14 = vadd.f32 %v265_v13, %v264_v12  ;;  %p736_p7 = por %p735_p6, %p734_p5 }
  0x25   : > { %p732_p3 = pneg %p731_p2 }
  0x27   : > { %p737_p9 = pnand %p736_p7, %p732_p3 }
  0x35   : > { %308 = vperm.xlu0 %680, %v254_v7  }
  0x94   : > { %v259_v15 = vpop.xlane.xlu0 %258 }
  0x95   : > { %v290_v16 = vadd.f32 %v266_v14, %v259_v15 }
  0x9b   : > { %v287_v17 = vpop.f32.mrf.mxu0 }
  0x9c   : > { %v291_v18 = vmul.f32 2.0, %v287_v17 }
  0x9e   : > { %v292_v19 = vsub.f32 %v290_v16, %v291_v18 }
  0xa0   : > { %v293_v20 = vmax.f32 %v292_v19, 0.0 }
  0xa2   : > { %681 = vrsqrt.f32 %v293_v20  ;;  %vm301_vm1 = vcmp.eq.f32.partialorder %v293_v20, inf  ;;  %v304_v29 = vand.u32 2147483648, %v293_v20  ;;  %vm303_vm2 = vcmp.eq.f32.partialorder %v293_v20, 0.0 }
  0xa7   : > { %v309_v28 = vpop.permute.xlu0 %308 }
  0xa8   : > { %v682_v21 = vpop.eup %681 }
  0xa9   : > { %v295_v22 = vmul.f32 %v682_v21, %v293_v20 }
  0xab   : > { %v296_v23 = vmul.f32 %v682_v21, %v295_v22 }
  0xad   : > { %v297_v24 = vmul.f32 0.5, %v296_v23 }
  0xaf   : > { %v298_v25 = vsub.f32 1.5, %v297_v24 }
  0xb1   : > { %v299_v26 = vmul.f32 %v682_v21, %v298_v25 }
  0xb3   : > { %v300_v27 = vmul.f32 %v299_v26, %v293_v20 }
  0xb5   : > { %v302_v30 = vsel %vm301_vm1, %v293_v20, %v300_v27 }
  0xb6   : > { %v305_v31 = vsel %vm303_vm2, %v304_v29, %v302_v30 }
  0xb7   : > { %v892_v32 = vmul.f32 %v309_v28, %v305_v31 }
  0xb9   : > { %v315_v33 = vand.u32 2139095040, %v892_v32  ;;  %v312_v36 = vand.u32 2147483647, %v892_v32  ;;  %vm314_vm15 = vcmp.lt.s32.totalorder %v892_v32, 0 }
  0xbb   : > { %v316_v34 = vshrl.u32 %v315_v33, 23  ;;  %v319_v38 = vand.u32 8388607, %v312_v36  ;;  %vm950_vm0 = vcmp.le.f32.partialorder %v312_v36, 0.7853982 }
  0xbd   : > { %v600_v35 = vadd.s32 4294967169, %v316_v34  ;;  %v320_v42 = vor.u32 8388608, %v319_v38 }
  0xbf   : > { %v322_v37 = vadd.s32 1, %v600_v35  ;;  %v909_v2 = vshll.u32 %v320_v42, 8 }
  0xc1   : > { %vm323_vm3 = vcmp.gt.s32.totalorder %v322_v37, 0  ;;  %v361_v11 = vand.u32 65535, %v909_v2  ;;  %v362_v12 = vshrl.u32 %v909_v2, 16 }
  0xc2   : > { %v324_v39 = vsel %vm323_vm3, %v322_v37, 0 }
  0xc3   : > { %v326_v40 = vand.u32 31, %v324_v39  ;;  %v900_v43 = vshrl.u32 %v324_v39, 5 }
  0xc5   : > { %v898_v41 = vsub.s32 32, %v326_v40  ;;  %v329_v45 = vshll.u32 %v799_v44, %v326_v40  ;;  %v332_v47 = vshll.u32 %v800_v46, %v326_v40  ;;  %v335_v51 = vshll.u32 %v801_v49, %v326_v40 }
  0xc6   : > { %v338_v54 = vshll.u32 %v802_v52, %v326_v40  ;;  %v341_v57 = vshll.u32 %v803_v55, %v326_v40  ;;  %vm344_vm4 = vcmp.lt.s32.totalorder %v900_v43, 1  ;;  %vm347_vm5 = vcmp.lt.s32.totalorder %v900_v43, 4 }
  0xc7   : > { %v330_v48 = vshrl.u32 %v800_v46, %v898_v41  ;;  %v333_v50 = vshrl.u32 %v801_v49, %v898_v41  ;;  %v336_v53 = vshrl.u32 %v802_v52, %v898_v41  ;;  %v339_v56 = vshrl.u32 %v803_v55, %v898_v41 }
  0xc8   : > { %v342_v59 = vshrl.u32 %v804_v58, %v898_v41  ;;  %vm346_vm6 = vcmp.lt.s32.totalorder %v900_v43, 3  ;;  %vm345_vm7 = vcmp.lt.s32.totalorder %v900_v43, 2  ;;  %v328_v39 = vshrl.u32 %v799_v44, %v898_v41 }
  0xc9   : > { %v331_v60 = vor.u32 %v330_v48, %v329_v45  ;;  %v334_v61 = vor.u32 %v333_v50, %v332_v47  ;;  %v337_v62 = vor.u32 %v336_v53, %v335_v51  ;;  %v340_v63 = vor.u32 %v339_v56, %v338_v54 }
  0xca   : > { %v343_v1 = vor.u32 %v342_v59, %v341_v57 }
  0xcb   : > { %v352_v3 = vsel %vm344_vm4, %v331_v60, %v334_v61  ;;  %v356_v4 = vsel %vm344_vm4, %v334_v61, %v337_v62  ;;  %v353_v5 = vsel %vm347_vm5, %v340_v63, 920167782  ;;  %v349_v35 = vsel %vm347_vm5, %v337_v62, 2102212464 }
  0xcc   : > { %v357_v6 = vsel %vm347_vm5, %v343_v1, 1326507024  ;;  %v354_v7 = vsel %vm346_vm6, %v337_v62, %v353_v5  ;;  %v348_v48 = vsel %vm344_vm4, %v328_v39, %v331_v60  ;;  %v350_v49 = vsel %vm346_vm6, %v334_v61, %v349_v35 }
  0xcd   : > { %v358_v8 = vsel %vm346_vm6, %v340_v63, %v357_v6  ;;  %v355_v9 = vsel %vm345_vm7, %v352_v3, %v354_v7  ;;  %v351_v41 = vsel %vm345_vm7, %v348_v48, %v350_v49  ;;  %vm455_vm4 = vweird.f32 %v892_v32 }
  0xce   : > { %v359_v10 = vsel %vm345_vm7, %v356_v4, %v358_v8  ;;  %v385_v15 = vand.u32 65535, %v355_v9  ;;  %v386_v16 = vshrl.u32 %v355_v9, 16  ;;  %v405_v56 = vmul.u32 %v909_v2, %v351_v41 }
  0xcf   : > { %v363_v13 = vand.u32 65535, %v359_v10  ;;  %v364_v14 = vshrl.u32 %v359_v10, 16 }
  0xd0   : > { %v388_v19 = vmul.u32 %v386_v16, %v361_v11  ;;  %v389_v20 = vmul.u32 %v385_v15, %v362_v12  ;;  %v387_v24 = vmul.u32 %v385_v15, %v361_v11  ;;  %v390_v28 = vmul.u32 %v386_v16, %v362_v12 }
  0xd1   : > { %v366_v17 = vmul.u32 %v364_v14, %v361_v11  ;;  %v367_v18 = vmul.u32 %v363_v13, %v362_v12  ;;  %v365_v21 = vmul.u32 %v363_v13, %v361_v11  ;;  %v368_v23 = vmul.u32 %v364_v14, %v362_v12 }
  0xd2   : > { %v391_v25 = vshll.u32 %v388_v19, 16  ;;  %v393_v30 = vshll.u32 %v389_v20, 16  ;;  %v392_v46 = vshrl.u32 %v388_v19, 16  ;;  %v394_v52 = vshrl.u32 %v389_v20, 16 }
  0xd3   : > { %v369_v22 = vshll.u32 %v366_v17, 16  ;;  %v371_v26 = vshll.u32 %v367_v18, 16  ;;  %v370_v40 = vshrl.u32 %v366_v17, 16  ;;  %v372_v50 = vshrl.u32 %v367_v18, 16 }
  0xd4   : > { %vm395_vm9 = vc.u32 %v387_v24, %v391_v25  ;;  %v397_v31 = vadd.s32 %v391_v25, %v387_v24 }
  0xd5   : > { %vm373_vm8 = vc.u32 %v365_v21, %v369_v22  ;;  %v375_v27 = vadd.s32 %v369_v22, %v365_v21  ;;  %v396_v34 = vsel %vm395_vm9, 1, %v798_v0 }
  0xd6   : > { %v374_v29 = vsel %vm373_vm8, 1, %v798_v0  ;;  %v398_v38 = vadd.s32 %v396_v34, %v390_v28  ;;  %vm399_vm11 = vc.u32 %v397_v31, %v393_v30  ;;  %v401_v55 = vadd.s32 %v397_v31, %v393_v30 }
  0xd7   : > { %v376_v33 = vadd.s32 %v374_v29, %v368_v23  ;;  %vm377_vm10 = vc.u32 %v375_v27, %v371_v26  ;;  %v400_v45 = vsel %vm399_vm11, 1, %v798_v0 }
  0xd8   : > { %v378_v37 = vsel %vm377_vm10, 1, %v798_v0  ;;  %v402_v47 = vadd.s32 %v400_v45, %v398_v38 }
  0xd9   : > { %v380_v42 = vadd.s32 %v378_v37, %v376_v33 }
  0xda   : > { %v403_v53 = vadd.s32 %v402_v47, %v392_v46 }
  0xdb   : > { %v381_v51 = vadd.s32 %v380_v42, %v370_v40 }
  0xdc   : > { %v404_v44 = vadd.s32 %v403_v53, %v394_v52 }
  0xdd   : > { %v382_v54 = vadd.s32 %v381_v51, %v372_v50 }
  0xde   : > { %v408_v0 = vadd.s32 1, %v404_v44 }
  0xdf   : > { %vm407_vm12 = vc.u32 %v382_v54, %v401_v55  ;;  %v406_v43 = vadd.s32 %v401_v55, %v382_v54 }
  0xe0   : > { %v409_v57 = vsel %vm407_vm12, %v408_v0, %v404_v44 }
  0xe1   : > { %v410_v58 = vadd.s32 %v409_v57, %v405_v56 }
  0xe3   : > { %v411_v59 = vadd.s32 536870912, %v410_v58 }
  0xe5   : > { %v412_v60 = vshrl.u32 %v411_v59, 30 }
  0xe7   : > { %v413_v62 = vshll.u32 %v412_v60, 30  ;;  %v436_v23 = vsub.s32 4, %v412_v60 }
  0xe9   : > { %v414_v61 = vsub.s32 %v410_v58, %v413_v62  ;;  %v437_v28 = vsel %vm314_vm15, %v436_v23, %v412_v60 }
  0xea   : > { %v439_v31 = vsel %vm950_vm0, 0, %v437_v28 }
  0xeb   : > { %vm415_vm13 = vcmp.lt.s32.totalorder %v414_v61, 0  ;;  %v416_v63 = vsub.s32 0, %v414_v61  ;;  %v456_v37 = vand.u32 3, %v439_v31 }
  0xed   : > { %v417_v1 = vsel %vm415_vm13, %v416_v63, %v414_v61  ;;  %vm458_vm1 = vcmp.eq.s32.totalorder %v456_v37, 0  ;;  %vm461_vm2 = vcmp.eq.s32.totalorder %v456_v37, 2  ;;  %vm457_vm3 = vcmp.lt.s32.totalorder %v456_v37, 2 }
  0xee   : > { %v418_v3 = vclz %v417_v1 }
  0xf0   : > { %v601_v4 = vadd.s32 4294967294, %v418_v3 }
  0xf2   : > { %vm602_vm14 = vcmp.lt.s32.totalorder %v601_v4, 0 }
  0xf3   : > { %v421_v5 = vsel %vm602_vm14, 0, %v601_v4 }
  0xf4   : > { %v422_v6 = vsub.s32 32, %v421_v5  ;;  %v426_v7 = vsub.s32 4294967266, %v421_v5  ;;  %v423_v8 = vshll.u32 %v414_v61, %v421_v5 }
  0xf6   : > { %v424_v9 = vshrl.u32 %v406_v43, %v422_v6  ;;  %v427_v10 = vadd.s32 127, %v426_v7 }
  0xf8   : > { %v425_v2 = vor.u32 %v424_v9, %v423_v8  ;;  %v428_v11 = vshll.u32 %v427_v10, 23 }
  0xfa   : > { %v429_v12 = vor.u32 4788187, %v428_v11  ;;  %v432_v14 = vcvt.s32.f32 %v425_v2 }
  0xfc   : > { %v430_v13 = vand.u32 2147483647, %v429_v12 }
  0xfe   : > { %v433_v15 = vmul.f32 %v432_v14, %v430_v13 }
 0x100   : > { %v434_v16 = vxor.u32 2147483648, %v433_v15 }
 0x102   : > { %v435_v18 = vsel %vm314_vm15, %v434_v16, %v433_v15 }
 0x103   : > { %v438_v19 = vsel %vm950_vm0, %v892_v32, %v435_v18 }
 0x104   : > { %v440_v20 = vmul.f32 %v438_v19, %v438_v19 }
 0x106   : > { %v448_v21 = vmul.f32 -0.00019511016, %v440_v20  ;;  %v441_v22 = vmul.f32 -0.001358992, %v440_v20 }
 0x108   : > { %v449_v24 = vadd.f32 0.008332121, %v448_v21  ;;  %v442_v25 = vadd.f32 0.041655596, %v441_v22 }
 0x10a   : > { %v450_v26 = vmul.f32 %v449_v24, %v440_v20  ;;  %v443_v27 = vmul.f32 %v442_v25, %v440_v20 }
 0x10c   : > { %v451_v36 = vadd.f32 -0.16666654, %v450_v26  ;;  %v444_v29 = vadd.f32 -0.4999988, %v443_v27 }
 0x10e   : > { %v452_v30 = vmul.f32 %v451_v36, %v440_v20  ;;  %v445_v33 = vmul.f32 %v444_v29, %v440_v20 }
 0x110   : > { %v453_v34 = vadd.f32 1.0, %v452_v30  ;;  %v446_v35 = vadd.f32 1.0, %v445_v33 }
 0x112   : > { %v454_v38 = vmul.f32 %v453_v34, %v438_v19  ;;  %v462_v39 = vxor.u32 2147483648, %v446_v35 }
 0x114   : > { %v459_v40 = vxor.u32 2147483648, %v454_v38  ;;  %v463_v45 = vsel %vm461_vm2, %v462_v39, %v454_v38 }
 0x116   : > { %v460_v42 = vsel %vm458_vm1, %v446_v35, %v459_v40 }
 0x117   : > { %v464_v46 = vsel %vm457_vm3, %v460_v42, %v463_v45 }
 0x118   : > { %v465_v47 = vsel %vm455_vm4, nan, %v464_v46 }
 0x119   : > { %466 = vst [vmem:[%s235_s28] sm:$0xff] %v465_v47 }
 0x11a   : > { %740 = shalt.err (!%p737_p9)
}
 0x11b   : > { %611 = dma.vmem_to_hbm [thread:$0]  (%p865_p4), %s483_s29, 128, %s485_s30, %s468_s15  }
 0x11c PF: > { %p623_p10 = scmp.ge.s32.totalorder %s795_s17, 2  ;;  %s496_s11 = sand.u32 1, %s775_s12  }
 0x11d   : > { %s497_s18 = scalar_lea.sflag [#allocation4], %s496_s11 }
 0x11e   : > { %p618_p11 = pnand %p623_p10, %p872_p8 }
 0x120   : > { %p619_p12 = pneg %p618_p11 }
 0x122   : > { %770 = dma.done.wait (%p619_p12), %s497_s18, 128  }
 0x123   : > { %772 = vsyncadd (%p619_p12), %s497_s18, 4294967168  ;;  %s17_s17 = sadd.s32 1, %s795_s17   ;;  %s1005_s12 = smov %s779_s13 }
 0x124   : > { %p14_p13 = scmp.ge.s32.totalorder %s17_s17, 4   ;;  %s1006_s13 = smov %s783_s14 }
 0x125   : > { %s1007_s14 = smov %s878_s25  ;;  %s1008_s15 = smov %s791_s16 }
 0x126   : > { %s1009_s16 = smov %s1011_s20  ;;  %16 = sbr.rel (!%p14_p13) target bundleno = 5 (0x5), region = 76 }
 0x12b   :  { %503 = vsyncpa [#allocation3], 1 }
 0x12c   :  { %505 = vsyncpa [#allocation3 + $0x1], 1 }
 0x12d   :  { %506 = vsyncpa [#allocation4], 1 }
 0x12e   :  { %508 = vsyncpa [#allocation4 + $0x1], 1 }

</bundles_post_ra>
